<compile_context>
chip_gen: v6e
topology: v6e:2x2x1
jax: 0.10.0
libtpu: 0.0.40
codegen_flags: <defaults>
</compile_context>

<pallas_src>
import jax
import jax.numpy as jnp
from jax.experimental import pallas as pl
from jax.experimental.pallas import tpu as pltpu


def _round_up(n: int, m: int) -> int:
    return ((n + m - 1) // m) * m


def actor_mlp_kernel(x_ref, w1_ref, b1_ref, w2_ref, b2_ref, w3_ref, b3_ref, o_ref):
    # Layer 1: Linear + ReLU. Matmul operands in bf16 (native MXU path on
    # v5e/v6e/v7x); accumulation, bias add and activation in f32.
    x = x_ref[...].astype(jnp.bfloat16)
    h1 = jnp.dot(x, w1_ref[...], preferred_element_type=jnp.float32) + b1_ref[...]
    h1 = jnp.maximum(h1, 0.0)
    # Layer 2: Linear + ReLU
    h2 = jnp.dot(h1.astype(jnp.bfloat16), w2_ref[...],
                 preferred_element_type=jnp.float32) + b2_ref[...]
    h2 = jnp.maximum(h2, 0.0)
    # Layer 3: Linear + Tanh (tanh kept in f32 on the EUP)
    h3 = jnp.dot(h2.astype(jnp.bfloat16), w3_ref[...],
                 preferred_element_type=jnp.float32) + b3_ref[...]
    o_ref[...] = jnp.tanh(h3).astype(o_ref.dtype)


def actor_forward(state, params):
    """state: [B, in_features] float32. params: padded bf16 weights / f32 biases."""
    w1, b1 = params["w1"], params["b1"]
    w2, b2 = params["w2"], params["b2"]
    w3, b3 = params["w3"], params["b3"]
    in_dim = params["in_dim"]
    out_dim = params["out_dim"]

    B = state.shape[0]
    K_pad, F1 = w1.shape
    F2 = w2.shape[1]
    OUT_pad = w3.shape[1]

    # Batch tile: 128 rows (fills the MXU M dimension) when the batch is large
    # enough, otherwise the smallest sublane-aligned tile covering the batch.
    TM = 128 if B >= 128 else _round_up(max(B, 8), 8)
    B_pad = _round_up(B, TM)
    num_tiles = B_pad // TM

    # Zero-pad batch rows and input features to the lane/sublane-aligned shape.
    x = jnp.zeros((B_pad, K_pad), jnp.float32).at[:B, :in_dim].set(
        state.astype(jnp.float32))

    flops = 2 * B_pad * (K_pad * F1 + F1 * F2 + F2 * OUT_pad)
    bytes_accessed = int(
        x.size * x.dtype.itemsize
        + sum(int(p.size) * p.dtype.itemsize for p in (w1, b1, w2, b2, w3, b3))
        + B_pad * OUT_pad * 4)
    cost = pl.CostEstimate(flops=flops,
                           transcendentals=B_pad * OUT_pad,
                           bytes_accessed=bytes_accessed)

    # Constant-index specs: weight tiles stay resident in VMEM across grid steps.
    const = lambda shape: pl.BlockSpec(shape, lambda i: (0, 0))

    out_padded = pl.pallas_call(
        actor_mlp_kernel,
        out_shape=jax.ShapeDtypeStruct((B_pad, OUT_pad), jnp.float32),
        grid=(num_tiles,),
        in_specs=[
            pl.BlockSpec((TM, K_pad), lambda i: (i, 0)),
            const(w1.shape), const(b1.shape),
            const(w2.shape), const(b2.shape),
            const(w3.shape), const(b3.shape),
        ],
        out_specs=pl.BlockSpec((TM, OUT_pad), lambda i: (i, 0)),
        compiler_params=pltpu.CompilerParams(
            dimension_semantics=("parallel",)),
        cost_estimate=cost,
    )(x, w1, b1, w2, b2, w3, b3)

    return out_padded[:B, :out_dim]


def actor_forward_ref(state, params):
    """Pure-JAX reference (same bf16-matmul / f32-accumulate recipe)."""
    B = state.shape[0]
    x = jnp.zeros((B, params["w1"].shape[0]), jnp.float32)
    x = x.at[:, :params["in_dim"]].set(state.astype(jnp.float32))
    h = jnp.maximum(jnp.dot(x.astype(jnp.bfloat16), params["w1"],
                            preferred_element_type=jnp.float32) + params["b1"], 0.0)
    h = jnp.maximum(jnp.dot(h.astype(jnp.bfloat16), params["w2"],
                            preferred_element_type=jnp.float32) + params["b2"], 0.0)
    h = jnp.tanh(jnp.dot(h.astype(jnp.bfloat16), params["w3"],
                         preferred_element_type=jnp.float32) + params["b3"])
    return h[:, :params["out_dim"]]


def init_actor_params(key, actor_input_size, actor_output_size,
                      fc1_units=400, fc2_units=300):
    """PyTorch nn.Linear-style init (U[-1/sqrt(fan_in), +1/sqrt(fan_in)]),
    zero-padded to 128-lane-aligned shapes; weights cast to bf16 once here."""
    def linear(key, fan_in, fan_out, fan_in_pad, fan_out_pad):
        kw, kb = jax.random.split(key)
        bound = 1.0 / (fan_in ** 0.5)
        w = jax.random.uniform(kw, (fan_in, fan_out), jnp.float32, -bound, bound)
        b = jax.random.uniform(kb, (1, fan_out), jnp.float32, -bound, bound)
        w_pad = jnp.zeros((fan_in_pad, fan_out_pad), jnp.float32)
        w_pad = w_pad.at[:fan_in, :fan_out].set(w)
        b_pad = jnp.zeros((1, fan_out_pad), jnp.float32).at[:, :fan_out].set(b)
        return w_pad.astype(jnp.bfloat16), b_pad  # weights bf16, biases f32

    in_pad = _round_up(actor_input_size, 128)
    f1_pad = _round_up(fc1_units, 128)
    f2_pad = _round_up(fc2_units, 128)
    out_pad = _round_up(actor_output_size, 128)

    k1, k2, k3 = jax.random.split(key, 3)
    w1, b1 = linear(k1, actor_input_size, fc1_units, in_pad, f1_pad)
    w2, b2 = linear(k2, fc1_units, fc2_units, f1_pad, f2_pad)
    w3, b3 = linear(k3, fc2_units, actor_output_size, f2_pad, out_pad)
    return {"w1": w1, "b1": b1, "w2": w2, "b2": b2, "w3": w3, "b3": b3,
            "in_dim": actor_input_size, "out_dim": actor_output_size}


if __name__ == "__main__":
    key = jax.random.PRNGKey(0)
    k_params, k_state = jax.random.split(key)

    # Tennis-like sizes: 24-dim observation, 2-dim continuous action, batch=8.
    B, IN, OUT = 8, 24, 2
    params = init_actor_params(k_params, IN, OUT, fc1_units=400, fc2_units=300)
    state = jax.random.normal(k_state, (B, IN), jnp.float32)

    out = actor_forward(state, params)
    jax.block_until_ready(out)

    ref = actor_forward_ref(state, params)

    assert out.shape == (B, OUT)
    assert bool(jnp.all(jnp.abs(out) <= 1.0))          # tanh output bounded
    assert bool(jnp.allclose(out, ref, atol=2e-2, rtol=2e-2))  # bf16 drift tolerance

    print("KERNEL_OK")
</pallas_src>

<mosaic_0001>
module attributes {stable_mosaic.version = 11 : i64} {
  func.func @actor_mlp_kernel(%arg0: i32, %arg1: memref<8x128xf32, #tpu.memory_space<vmem>>, %arg2: memref<128x512xbf16, #tpu.memory_space<vmem>>, %arg3: memref<1x512xf32, #tpu.memory_space<vmem>>, %arg4: memref<512x384xbf16, #tpu.memory_space<vmem>>, %arg5: memref<1x384xf32, #tpu.memory_space<vmem>>, %arg6: memref<384x128xbf16, #tpu.memory_space<vmem>>, %arg7: memref<1x128xf32, #tpu.memory_space<vmem>>, %arg8: memref<8x128xf32, #tpu.memory_space<vmem>>) attributes {dimension_semantics = [#tpu.dimension_semantics<parallel>], iteration_bounds = array<i64: 1>, scalar_prefetch = 0 : i64, scratch_operands = 0 : i64, tpu.core_type = #tpu.core_type<tc>, window_params = [{transform_indices = @transform_0, window_bounds = array<i64: 8, 128>}, {pipeline_mode = #tpu.pipeline_mode<synchronous>, transform_indices = @transform_1, window_bounds = array<i64: 128, 512>}, {pipeline_mode = #tpu.pipeline_mode<synchronous>, transform_indices = @transform_2, window_bounds = array<i64: 1, 512>}, {pipeline_mode = #tpu.pipeline_mode<synchronous>, transform_indices = @transform_3, window_bounds = array<i64: 512, 384>}, {pipeline_mode = #tpu.pipeline_mode<synchronous>, transform_indices = @transform_4, window_bounds = array<i64: 1, 384>}, {pipeline_mode = #tpu.pipeline_mode<synchronous>, transform_indices = @transform_5, window_bounds = array<i64: 384, 128>}, {pipeline_mode = #tpu.pipeline_mode<synchronous>, transform_indices = @transform_6, window_bounds = array<i64: 1, 128>}, {transform_indices = @transform_7, window_bounds = array<i64: 8, 128>}]} {
    %c0 = arith.constant 0 : index
    %c0_0 = arith.constant 0 : index
    %0 = vector.load %arg1[%c0, %c0_0] : memref<8x128xf32, #tpu.memory_space<vmem>>, vector<8x128xf32>
    %1 = arith.truncf %0 : vector<8x128xf32> to vector<8x128xbf16>
    %c0_1 = arith.constant 0 : index
    %c0_2 = arith.constant 0 : index
    %2 = vector.load %arg2[%c0_1, %c0_2] : memref<128x512xbf16, #tpu.memory_space<vmem>>, vector<128x512xbf16>
    %cst = arith.constant dense<0.000000e+00> : vector<8x512xf32>
    %3 = tpu.matmul %1, %2, %cst {dimension_numbers = #tpu.dot_dimension_numbers<[1], [0], [0], [1], [0, 0, 1, 1], [], []>} : vector<8x128xbf16>, vector<128x512xbf16>, vector<8x512xf32> -> vector<8x512xf32>
    %c0_3 = arith.constant 0 : index
    %c0_4 = arith.constant 0 : index
    %4 = vector.load %arg3[%c0_3, %c0_4] : memref<1x512xf32, #tpu.memory_space<vmem>>, vector<1x512xf32>
    %5 = vector.broadcast %4 : vector<1x512xf32> to vector<8x512xf32>
    %6 = arith.addf %3, %5 : vector<8x512xf32>
    %cst_5 = arith.constant 0.000000e+00 : f32
    %7 = vector.broadcast %cst_5 : f32 to vector<8x512xf32>
    %8 = arith.maximumf %6, %7 : vector<8x512xf32>
    %9 = arith.truncf %8 : vector<8x512xf32> to vector<8x512xbf16>
    %c0_6 = arith.constant 0 : index
    %c0_7 = arith.constant 0 : index
    %10 = vector.load %arg4[%c0_6, %c0_7] : memref<512x384xbf16, #tpu.memory_space<vmem>>, vector<512x384xbf16>
    %cst_8 = arith.constant dense<0.000000e+00> : vector<8x384xf32>
    %11 = tpu.matmul %9, %10, %cst_8 {dimension_numbers = #tpu.dot_dimension_numbers<[1], [0], [0], [1], [0, 0, 1, 1], [], []>} : vector<8x512xbf16>, vector<512x384xbf16>, vector<8x384xf32> -> vector<8x384xf32>
    %c0_9 = arith.constant 0 : index
    %c0_10 = arith.constant 0 : index
    %12 = vector.load %arg5[%c0_9, %c0_10] : memref<1x384xf32, #tpu.memory_space<vmem>>, vector<1x384xf32>
    %13 = vector.broadcast %12 : vector<1x384xf32> to vector<8x384xf32>
    %14 = arith.addf %11, %13 : vector<8x384xf32>
    %cst_11 = arith.constant 0.000000e+00 : f32
    %15 = vector.broadcast %cst_11 : f32 to vector<8x384xf32>
    %16 = arith.maximumf %14, %15 : vector<8x384xf32>
    %17 = arith.truncf %16 : vector<8x384xf32> to vector<8x384xbf16>
    %c0_12 = arith.constant 0 : index
    %c0_13 = arith.constant 0 : index
    %18 = vector.load %arg6[%c0_12, %c0_13] : memref<384x128xbf16, #tpu.memory_space<vmem>>, vector<384x128xbf16>
    %cst_14 = arith.constant dense<0.000000e+00> : vector<8x128xf32>
    %19 = tpu.matmul %17, %18, %cst_14 {dimension_numbers = #tpu.dot_dimension_numbers<[1], [0], [0], [1], [0, 0, 1, 1], [], []>} : vector<8x384xbf16>, vector<384x128xbf16>, vector<8x128xf32> -> vector<8x128xf32>
    %c0_15 = arith.constant 0 : index
    %c0_16 = arith.constant 0 : index
    %20 = vector.load %arg7[%c0_15, %c0_16] : memref<1x128xf32, #tpu.memory_space<vmem>>, vector<1x128xf32>
    %21 = vector.broadcast %20 : vector<1x128xf32> to vector<8x128xf32>
    %22 = arith.addf %19, %21 : vector<8x128xf32>
    %23 = math.tanh %22 : vector<8x128xf32>
    %c0_17 = arith.constant 0 : index
    %c0_18 = arith.constant 0 : index
    %24 = vector.load %arg8[%c0_17, %c0_18] : memref<8x128xf32, #tpu.memory_space<vmem>>, vector<8x128xf32>
    tpu.vector_store %arg8[%c0_17, %c0_18], %23 {strides = array<i32>} : memref<8x128xf32, #tpu.memory_space<vmem>>, vector<8x128xf32>,
    return
  }
  func.func @transform_0(%arg0: i32) -> (i32, i32) {
    %c0_i32 = arith.constant 0 : i32
    %c0_i32_0 = arith.constant 0 : i32
    return %arg0, %c0_i32 : i32, i32
  }
  func.func @transform_1(%arg0: i32) -> (i32, i32) {
    %c0_i32 = arith.constant 0 : i32
    %c0_i32_0 = arith.constant 0 : i32
    %c0_i32_1 = arith.constant 0 : i32
    return %c0_i32, %c0_i32_0 : i32, i32
  }
  func.func @transform_2(%arg0: i32) -> (i32, i32) {
    %c0_i32 = arith.constant 0 : i32
    %c0_i32_0 = arith.constant 0 : i32
    %c0_i32_1 = arith.constant 0 : i32
    return %c0_i32, %c0_i32_0 : i32, i32
  }
  func.func @transform_3(%arg0: i32) -> (i32, i32) {
    %c0_i32 = arith.constant 0 : i32
    %c0_i32_0 = arith.constant 0 : i32
    %c0_i32_1 = arith.constant 0 : i32
    return %c0_i32, %c0_i32_0 : i32, i32
  }
  func.func @transform_4(%arg0: i32) -> (i32, i32) {
    %c0_i32 = arith.constant 0 : i32
    %c0_i32_0 = arith.constant 0 : i32
    %c0_i32_1 = arith.constant 0 : i32
    return %c0_i32, %c0_i32_0 : i32, i32
  }
  func.func @transform_5(%arg0: i32) -> (i32, i32) {
    %c0_i32 = arith.constant 0 : i32
    %c0_i32_0 = arith.constant 0 : i32
    %c0_i32_1 = arith.constant 0 : i32
    return %c0_i32, %c0_i32_0 : i32, i32
  }
  func.func @transform_6(%arg0: i32) -> (i32, i32) {
    %c0_i32 = arith.constant 0 : i32
    %c0_i32_0 = arith.constant 0 : i32
    %c0_i32_1 = arith.constant 0 : i32
    return %c0_i32, %c0_i32_0 : i32, i32
  }
  func.func @transform_7(%arg0: i32) -> (i32, i32) {
    %c0_i32 = arith.constant 0 : i32
    %c0_i32_0 = arith.constant 0 : i32
    return %arg0, %c0_i32 : i32, i32
  }
}

</mosaic_0001>

<bundles_post_ra>
// kernel: tpu_custom_call.1
= control target key start
LH: loop header
LB: loop body
LE: loop exit
PB: predicated region body
PF: predicated region fallthrough
CT: control target
= control target key end

     0   :  { %12 = vsyncpa [#allocation3], 0  ;;  %s2219_s0 = inlined_call_operand.hbm [shape: f32[8,128], index: 0, kind: input, shape index: {}]   ;;  %s2220_s1 = inlined_call_operand.hbm [shape: bf16[128,512], index: 1, kind: input, shape index: {}]   ;;  %s2221_s2 = inlined_call_operand.hbm [shape: f32[1,512], index: 2, kind: input, shape index: {}]   ;;  %s2222_s3 = inlined_call_operand.hbm [shape: bf16[512,384], index: 3, kind: input, shape index: {}]   ;;  %s2223_s4 = inlined_call_operand.vmem [shape: f32[1,384], index: 4, kind: input, shape index: {}]   ;;  %s2224_s5 = inlined_call_operand.hbm [shape: bf16[384,128], index: 5, kind: input, shape index: {}]   ;;  %s2225_s6 = inlined_call_operand.vmem [shape: f32[1,128], index: 6, kind: input, shape index: {}]   ;;  %s2226_s7 = inlined_call_operand.hbm [shape: f32[8,128], index: 7, kind: output, shape index: {}]  }
   0x1   :  { %13 = vsyncpa [#allocation6], 0 }
   0x2   :  { %14 = vsyncpa [#allocation9], 0 }
   0x3   :  { %15 = vsyncpa [#allocation4], 0  ;;  %s2114_s24 = smov [#allocation5]  }
   0x4   :  { %s31_s25 = sshll.u32 %s2114_s24, 4  ;;  %s32_s25 = int_to_ptr.vmem [resolvable:$true] %s31_s25 }
   0x5   :  { %s1994_s26 = scalar_lea.vmem %s32_s25, 4096  ;;  %p1999_p1 = scmp.lt.s32.totalorder %s32_s25, %s32_s25 }
   0x6   :  { %p1995_p0 = scmp.ne.s32.totalorder %s32_s25, %s1994_s26  ;;  %p2000_p2 = scmp.lt.s32.totalorder %s1994_s26, %s1994_s26 }
   0x8   :  { %p2001_p3 = por %p2000_p2, %p1999_p1 }
   0xa   :  { %p2002_p4 = pnand %p2001_p3, %p1995_p0 }
   0xc   :  { %2005 = shalt.err (!%p2002_p4)
}
   0xd   :  { %s2115_s27 = smov 256   ;;  %s2116_s28 = smov 16  }
   0xe   :  { %37 = dma.hbm_to_vmem [thread:$0]  %s2220_s1, 4096, %s32_s25, [#allocation6], %s2115_s27, %s2115_s27, %s2116_s28  }
   0xf   :  { %s2117_s8 = smov [#allocation8]  }
  0x10   :  { %s53_s9 = sshll.u32 %s2117_s8, 4  ;;  %s54_s9 = int_to_ptr.vmem [resolvable:$true] %s53_s9 }
  0x11   :  { %s2014_s10 = scalar_lea.vmem %s54_s9, 12288  ;;  %p2019_p6 = scmp.lt.s32.totalorder %s54_s9, %s54_s9 }
  0x12   :  { %p2015_p5 = scmp.ne.s32.totalorder %s54_s9, %s2014_s10  ;;  %p2020_p7 = scmp.lt.s32.totalorder %s2014_s10, %s2014_s10 }
  0x14   :  { %p2021_p8 = por %p2020_p7, %p2019_p6 }
  0x16   :  { %p2022_p9 = pnand %p2021_p8, %p2015_p5 }
  0x18   :  { %2025 = shalt.err (!%p2022_p9)
}
  0x19   :  { %s2118_s11 = smov 192   ;;  %s2119_s12 = smov 12  }
  0x1a   :  { %59 = dma.hbm_to_vmem [thread:$0]  %s2222_s3, 12288, %s54_s9, [#allocation9], %s2118_s11, %s2118_s11, %s2119_s12  }
  0x1b   :  { %s2120_s15 = smov [#allocation2]   ;;  %s2121_s17 = smov [#allocation7]  }
  0x1c   :  { %s22_s16 = sshll.u32 %s2120_s15, 4  ;;  %s44_s1 = sshll.u32 %s2121_s17, 4  ;;  %s23_s16 = int_to_ptr.vmem [resolvable:$true] %s22_s16  ;;  %s45_s1 = int_to_ptr.vmem [resolvable:$true] %s44_s1 }
  0x1d   :  { %s2034_s18 = scalar_lea.vmem %s23_s16, 128  ;;  %p2039_p11 = scmp.lt.s32.totalorder %s23_s16, %s23_s16 }
  0x1e   :  { %p2035_p10 = scmp.ne.s32.totalorder %s23_s16, %s2034_s18  ;;  %p2040_p12 = scmp.lt.s32.totalorder %s2034_s18, %s2034_s18 }
  0x20   :  { %p2041_p13 = por %p2040_p12, %p2039_p11 }
  0x22   :  { %p2042_p0 = pnand %p2041_p13, %p2035_p10 }
  0x24   :  { %2045 = shalt.err (!%p2042_p0)
}
  0x25   :  { %25 = dma.hbm_to_vmem [thread:$0]  %s2219_s0, 128, %s23_s16, [#allocation3]  }
  0x26   :  { %s2054_s21 = scalar_lea.vmem %s45_s1, 64  ;;  %p2059_p2 = scmp.lt.s32.totalorder %s45_s1, %s45_s1 }
  0x27   :  { %p2055_p1 = scmp.ne.s32.totalorder %s45_s1, %s2054_s21  ;;  %p2060_p3 = scmp.lt.s32.totalorder %s2054_s21, %s2054_s21 }
  0x29   :  { %p2061_p4 = por %p2060_p3, %p2059_p2 }
  0x2b   :  { %p2062_p5 = pnand %p2061_p4, %p2055_p1 }
  0x2d   :  { %2065 = shalt.err (!%p2062_p5)
}
  0x2e   :  { %47 = dma.hbm_to_vmem [thread:$0]  %s2221_s2, 64, %s45_s1, [#allocation6]  }
  0x2f   :  { %s2122_s23 = smov [#allocation10]  }
  0x30   :  { %s67_s24 = sshll.u32 %s2122_s23, 4  ;;  %s68_s24 = int_to_ptr.vmem [resolvable:$true] %s67_s24 }
  0x31   :  { %s2074_s25 = scalar_lea.vmem %s68_s24, 3072  ;;  %p2079_p7 = scmp.lt.s32.totalorder %s68_s24, %s68_s24 }
  0x32   :  { %p2075_p6 = scmp.ne.s32.totalorder %s68_s24, %s2074_s25  ;;  %p2080_p8 = scmp.lt.s32.totalorder %s2074_s25, %s2074_s25 }
  0x34   :  { %p2081_p9 = por %p2080_p8, %p2079_p7 }
  0x36   :  { %p2082_p10 = pnand %p2081_p9, %p2075_p6 }
  0x38   :  { %2085 = shalt.err (!%p2082_p10)
}
  0x39   :  { %s2123_s0 = smov 64   ;;  %s2124_s26 = smov 4  }
  0x3a   :  { %73 = dma.hbm_to_vmem [thread:$0]  %s2224_s5, 3072, %s68_s24, [#allocation9], %s2123_s0, %s2123_s0, %s2124_s26  }
  0x3b   :  { %2106 = dma.done.wait [#allocation3], 128  }
  0x3c   :  { %2107 = vsyncadd [#allocation3], 4294967168 }
  0x3d   :  { %2108 = dma.done.wait [#allocation6], 4160  }
  0x3e   :  { %2109 = vsyncadd [#allocation6], 4294963136 }
  0x3f   :  { %2110 = dma.done.wait [#allocation9], 15360  }
  0x40   :  { %2111 = vsyncadd [#allocation9], 4294951936  ;;  %v2125_v0 = vmov 0   ;;  %v1784_v1 = vld [vmem:[#allocation5 + $0xe4] ss:$16 sps:$4 sm:$0xff]   ;;  %v92_v33 = vld [vmem:[#allocation2] sm:$0xff] }
  0x41   :  { %340 = vmatprep.mubr.bf16.mxu0 %v2125_v0  ;;  %381 = vmatprep.mubr.bf16.mxu1 %v2125_v0  ;;  %v1786_v2 = vld [vmem:[#allocation5 + $0xec] ss:$16 sps:$4 sm:$0xff]   ;;  %v1788_v3 = vld [vmem:[#allocation5 + $0xe0] ss:$16 sps:$4 sm:$0xff]   ;;  %v1789_v4 = vld [vmem:[#allocation5 + $0xe8] ss:$16 sps:$4 sm:$0xff]   ;;  %v93_v36 = vpack.c.bf16 %v92_v33, %v92_v33 }
  0x42   :  { %308 = vmatprep.subr.bf16.mxu0 %v1784_v1  ;;  %349 = vmatprep.subr.bf16.mxu1 %v1786_v2  ;;  %v1790_v5 = vld [vmem:[#allocation5 + $0xc4] ss:$16 sps:$4 sm:$0xff]   ;;  %v1792_v6 = vld [vmem:[#allocation5 + $0xcc] ss:$16 sps:$4 sm:$0xff]   ;;  %v1794_v7 = vld [vmem:[#allocation5 + $0xc0] ss:$16 sps:$4 sm:$0xff]  }
  0x43   :  { %309 = vmatpush1.bf16.msra.mxu0 %v1788_v3  ;;  %350 = vmatpush1.bf16.msra.mxu1 %v1789_v4  ;;  %v1795_v8 = vld [vmem:[#allocation5 + $0xc8] ss:$16 sps:$4 sm:$0xff]   ;;  %v1796_v9 = vld [vmem:[#allocation5 + $0xa4] ss:$16 sps:$4 sm:$0xff]   ;;  %v1798_v10 = vld [vmem:[#allocation5 + $0xac] ss:$16 sps:$4 sm:$0xff]  }
  0x44   :  { %310 = vmatprep.subr.bf16.mxu0 %v1790_v5  ;;  %351 = vmatprep.subr.bf16.mxu1 %v1792_v6  ;;  %v1800_v11 = vld [vmem:[#allocation5 + $0xa0] ss:$16 sps:$4 sm:$0xff]   ;;  %v1801_v12 = vld [vmem:[#allocation5 + $0xa8] ss:$16 sps:$4 sm:$0xff]   ;;  %v1802_v13 = vld [vmem:[#allocation5 + $0x84] ss:$16 sps:$4 sm:$0xff]  }
  0x45   :  { %v1804_v14 = vld [vmem:[#allocation5 + $0x8c] ss:$16 sps:$4 sm:$0xff]   ;;  %v1806_v15 = vld [vmem:[#allocation5 + $0x80] ss:$16 sps:$4 sm:$0xff]   ;;  %v1807_v16 = vld [vmem:[#allocation5 + $0x88] ss:$16 sps:$4 sm:$0xff]  }
  0x46   :  { %v1808_v17 = vld [vmem:[#allocation5 + $0x64] ss:$16 sps:$4 sm:$0xff]   ;;  %v1810_v18 = vld [vmem:[#allocation5 + $0x6c] ss:$16 sps:$4 sm:$0xff]   ;;  %v1812_v19 = vld [vmem:[#allocation5 + $0x60] ss:$16 sps:$4 sm:$0xff]  }
  0x47   :  { %311 = vmatpush1.bf16.msra.mxu0 %v1794_v7  ;;  %352 = vmatpush1.bf16.msra.mxu1 %v1795_v8  ;;  %v1813_v20 = vld [vmem:[#allocation5 + $0x68] ss:$16 sps:$4 sm:$0xff]   ;;  %v1814_v21 = vld [vmem:[#allocation5 + $0x44] ss:$16 sps:$4 sm:$0xff]   ;;  %v1816_v22 = vld [vmem:[#allocation5 + $0x4c] ss:$16 sps:$4 sm:$0xff]  }
  0x48   :  { %312 = vmatprep.subr.bf16.mxu0 %v1796_v9  ;;  %353 = vmatprep.subr.bf16.mxu1 %v1798_v10  ;;  %v1818_v23 = vld [vmem:[#allocation5 + $0x40] ss:$16 sps:$4 sm:$0xff]   ;;  %v1819_v24 = vld [vmem:[#allocation5 + $0x48] ss:$16 sps:$4 sm:$0xff]   ;;  %v1820_v25 = vld [vmem:[#allocation5 + $0x24] ss:$16 sps:$4 sm:$0xff]  }
  0x49   :  { %v1822_v26 = vld [vmem:[#allocation5 + $0x2c] ss:$16 sps:$4 sm:$0xff]   ;;  %v1824_v27 = vld [vmem:[#allocation5 + $0x20] ss:$16 sps:$4 sm:$0xff]   ;;  %v1825_v28 = vld [vmem:[#allocation5 + $0x28] ss:$16 sps:$4 sm:$0xff]  }
  0x4a   :  { %v1826_v29 = vld [vmem:[#allocation5 + $0x4] ss:$16 sps:$4 sm:$0xff]   ;;  %v1828_v30 = vld [vmem:[#allocation5 + $0xc] ss:$16 sps:$4 sm:$0xff]   ;;  %v1830_v31 = vld [vmem:[#allocation5] ss:$16 sps:$4 sm:$0xff]  }
  0x4b   :  { %313 = vmatpush1.bf16.msra.mxu0 %v1800_v11  ;;  %354 = vmatpush1.bf16.msra.mxu1 %v1801_v12  ;;  %v1831_v32 = vld [vmem:[#allocation5 + $0x8] ss:$16 sps:$4 sm:$0xff]   ;;  %v1834_v34 = vld [vmem:[#allocation8 + $0xac] ss:$12 sps:$4 sm:$0xff]   ;;  %v1838_v41 = vld [vmem:[#allocation8 + $0x90] ss:$12 sps:$4 sm:$0xff]  }
  0x4c   :  { %314 = vmatprep.subr.bf16.mxu0 %v1802_v13  ;;  %355 = vmatprep.subr.bf16.mxu1 %v1804_v14  ;;  %v1837_v35 = vld [vmem:[#allocation8 + $0x22c] ss:$12 sps:$4 sm:$0xff]   ;;  %v1832_v37 = vld [vmem:[#allocation8 + $0xa8] ss:$12 sps:$4 sm:$0xff]   ;;  %v1841_v42 = vld [vmem:[#allocation8 + $0x210] ss:$12 sps:$4 sm:$0xff]  }
  0x4d   :  { %v1835_v38 = vld [vmem:[#allocation8 + $0x228] ss:$12 sps:$4 sm:$0xff]   ;;  %v1844_v45 = vld [vmem:[#allocation8 + $0x78] ss:$12 sps:$4 sm:$0xff]   ;;  %v1850_v49 = vld [vmem:[#allocation8 + $0x60] ss:$12 sps:$4 sm:$0xff]  }
  0x4e   :  { %v1840_v39 = vld [vmem:[#allocation8 + $0x94] ss:$12 sps:$4 sm:$0xff]   ;;  %v1846_v43 = vld [vmem:[#allocation8 + $0x7c] ss:$12 sps:$4 sm:$0xff]   ;;  %v1847_v46 = vld [vmem:[#allocation8 + $0x1f8] ss:$12 sps:$4 sm:$0xff]  }
  0x4f   :  { %315 = vmatpush1.bf16.msra.mxu0 %v1806_v15  ;;  %356 = vmatpush1.bf16.msra.mxu1 %v1807_v16  ;;  %v1843_v40 = vld [vmem:[#allocation8 + $0x214] ss:$12 sps:$4 sm:$0xff]   ;;  %v1849_v44 = vld [vmem:[#allocation8 + $0x1fc] ss:$12 sps:$4 sm:$0xff]   ;;  %v1852_v47 = vld [vmem:[#allocation8 + $0x64] ss:$12 sps:$4 sm:$0xff]  }
  0x50   :  { %316 = vmatprep.subr.bf16.mxu0 %v1808_v17  ;;  %357 = vmatprep.subr.bf16.mxu1 %v1810_v18  ;;  %v1855_v48 = vld [vmem:[#allocation8 + $0x1e4] ss:$12 sps:$4 sm:$0xff]   ;;  %v1853_v50 = vld [vmem:[#allocation8 + $0x1e0] ss:$12 sps:$4 sm:$0xff]   ;;  %v1856_v53 = vld [vmem:[#allocation8 + $0x48] ss:$12 sps:$4 sm:$0xff]  }
  0x51   :  { %v1858_v51 = vld [vmem:[#allocation8 + $0x4c] ss:$12 sps:$4 sm:$0xff]   ;;  %v1859_v54 = vld [vmem:[#allocation8 + $0x1c8] ss:$12 sps:$4 sm:$0xff]   ;;  %v1862_v57 = vld [vmem:[#allocation8 + $0x30] ss:$12 sps:$4 sm:$0xff]  }
  0x52   :  { %v1861_v52 = vld [vmem:[#allocation8 + $0x1cc] ss:$12 sps:$4 sm:$0xff]   ;;  %v1864_v55 = vld [vmem:[#allocation8 + $0x34] ss:$12 sps:$4 sm:$0xff]   ;;  %v1865_v58 = vld [vmem:[#allocation8 + $0x1b0] ss:$12 sps:$4 sm:$0xff]  }
  0x53   :  { %317 = vmatpush1.bf16.msra.mxu0 %v1812_v19  ;;  %358 = vmatpush1.bf16.msra.mxu1 %v1813_v20  ;;  %v1867_v56 = vld [vmem:[#allocation8 + $0x1b4] ss:$12 sps:$4 sm:$0xff]   ;;  %v1870_v59 = vld [vmem:[#allocation8 + $0x1c] ss:$12 sps:$4 sm:$0xff]   ;;  %v1868_v61 = vld [vmem:[#allocation8 + $0x18] ss:$12 sps:$4 sm:$0xff]  }
  0x54   :  { %318 = vmatprep.subr.bf16.mxu0 %v1814_v21  ;;  %359 = vmatprep.subr.bf16.mxu1 %v1816_v22  ;;  %v1873_v60 = vld [vmem:[#allocation8 + $0x19c] ss:$12 sps:$4 sm:$0xff]   ;;  %v1871_v62 = vld [vmem:[#allocation8 + $0x198] ss:$12 sps:$4 sm:$0xff]   ;;  %v1874_v1 = vld [vmem:[#allocation8] ss:$12 sps:$4 sm:$0xff]  }
  0x55   :  { %v1876_v63 = vld [vmem:[#allocation8 + $0x4] ss:$12 sps:$4 sm:$0xff]   ;;  %v1877_v2 = vld [vmem:[#allocation8 + $0x180] ss:$12 sps:$4 sm:$0xff]   ;;  %v1880_v5 = vld [vmem:[#allocation8 + $0x168] ss:$12 sps:$4 sm:$0xff]  }
  0x56   :  { %v1879_v0 = vld [vmem:[#allocation8 + $0x184] ss:$12 sps:$4 sm:$0xff]   ;;  %v1882_v3 = vld [vmem:[#allocation8 + $0x16c] ss:$12 sps:$4 sm:$0xff]   ;;  %v1883_v6 = vld [vmem:[#allocation8 + $0x2e8] ss:$12 sps:$4 sm:$0xff]  }
  0x57   :  { %319 = vmatpush1.bf16.msra.mxu0 %v1818_v23  ;;  %360 = vmatpush1.bf16.msra.mxu1 %v1819_v24  ;;  %v1885_v4 = vld [vmem:[#allocation8 + $0x2ec] ss:$12 sps:$4 sm:$0xff]   ;;  %v1888_v7 = vld [vmem:[#allocation8 + $0x154] ss:$12 sps:$4 sm:$0xff]   ;;  %v1886_v9 = vld [vmem:[#allocation8 + $0x150] ss:$12 sps:$4 sm:$0xff]  }
  0x58   :  { %320 = vmatprep.subr.bf16.mxu0 %v1820_v25  ;;  %361 = vmatprep.subr.bf16.mxu1 %v1822_v26  ;;  %v1891_v8 = vld [vmem:[#allocation8 + $0x2d4] ss:$12 sps:$4 sm:$0xff]   ;;  %v1889_v10 = vld [vmem:[#allocation8 + $0x2d0] ss:$12 sps:$4 sm:$0xff]   ;;  %v1892_v13 = vld [vmem:[#allocation8 + $0x138] ss:$12 sps:$4 sm:$0xff]  }
  0x59   :  { %v1894_v11 = vld [vmem:[#allocation8 + $0x13c] ss:$12 sps:$4 sm:$0xff]   ;;  %v1895_v14 = vld [vmem:[#allocation8 + $0x2b8] ss:$12 sps:$4 sm:$0xff]   ;;  %v1898_v17 = vld [vmem:[#allocation8 + $0x120] ss:$12 sps:$4 sm:$0xff]  }
  0x5a   :  { %v1897_v12 = vld [vmem:[#allocation8 + $0x2bc] ss:$12 sps:$4 sm:$0xff]   ;;  %v1900_v15 = vld [vmem:[#allocation8 + $0x124] ss:$12 sps:$4 sm:$0xff]   ;;  %v1901_v18 = vld [vmem:[#allocation8 + $0x2a0] ss:$12 sps:$4 sm:$0xff]  }
  0x5b   :  { %321 = vmatpush1.bf16.msra.mxu0 %v1824_v27  ;;  %362 = vmatpush1.bf16.msra.mxu1 %v1825_v28  ;;  %v1903_v16 = vld [vmem:[#allocation8 + $0x2a4] ss:$12 sps:$4 sm:$0xff]   ;;  %v1906_v19 = vld [vmem:[#allocation8 + $0x10c] ss:$12 sps:$4 sm:$0xff]   ;;  %v1904_v21 = vld [vmem:[#allocation8 + $0x108] ss:$12 sps:$4 sm:$0xff]  }
  0x5c   :  { %322 = vmatprep.subr.bf16.mxu0 %v1826_v29  ;;  %363 = vmatprep.subr.bf16.mxu1 %v1828_v30  ;;  %v1909_v20 = vld [vmem:[#allocation8 + $0x28c] ss:$12 sps:$4 sm:$0xff]   ;;  %v1907_v22 = vld [vmem:[#allocation8 + $0x288] ss:$12 sps:$4 sm:$0xff]   ;;  %v1910_v25 = vld [vmem:[#allocation8 + $0xf0] ss:$12 sps:$4 sm:$0xff]  }
  0x5d   :  { %v1912_v23 = vld [vmem:[#allocation8 + $0xf4] ss:$12 sps:$4 sm:$0xff]   ;;  %v1913_v26 = vld [vmem:[#allocation8 + $0x270] ss:$12 sps:$4 sm:$0xff]   ;;  %v1916_v29 = vld [vmem:[#allocation8 + $0xd8] ss:$12 sps:$4 sm:$0xff]  }
  0x5e   :  { %v1915_v24 = vld [vmem:[#allocation8 + $0x274] ss:$12 sps:$4 sm:$0xff]   ;;  %v1918_v27 = vld [vmem:[#allocation8 + $0xdc] ss:$12 sps:$4 sm:$0xff]   ;;  %v1919_v30 = vld [vmem:[#allocation8 + $0x258] ss:$12 sps:$4 sm:$0xff]  }
  0x5f   :  { %323 = vmatpush1.bf16.msra.mxu0 %v1830_v31  ;;  %364 = vmatpush1.bf16.msra.mxu1 %v1831_v32  ;;  %v1921_v28 = vld [vmem:[#allocation8 + $0x25c] ss:$12 sps:$4 sm:$0xff]   ;;  %v1924_v31 = vld [vmem:[#allocation8 + $0xc4] ss:$12 sps:$4 sm:$0xff]   ;;  %v1922_v33 = vld [vmem:[#allocation8 + $0xc0] ss:$12 sps:$4 sm:$0xff]  }
  0x60   :  { %1055 = vmatprep.subr.bf16.mxu0 %v1834_v34  ;;  %1096 = vmatprep.subr.bf16.mxu1 %v1837_v35  ;;  %v1927_v32 = vld [vmem:[#allocation8 + $0x244] ss:$12 sps:$4 sm:$0xff]   ;;  %v1925_v34 = vld [vmem:[#allocation8 + $0x240] ss:$12 sps:$4 sm:$0xff]   ;;  %vm2127_vm0 = vmmov 0   ;;  %s2128_s30 = smov [#allocation11]  }
  0x61   :  { %v1928_v35 = vld [vmem:[#allocation8 + $0x170] ss:$12 sps:$4 sm:$0xff]   ;;  %s1510_s8 = sshll.u32 %s2128_s30, 4  ;;  %s1511_s8 = int_to_ptr.vmem [resolvable:$true] %s1510_s8 }
  0x62   :  { %341 = vmatmul.mubr.bf16.vlgmr.msra.gmra.mxu0 %v93_v36  ;;  %382 = vmatmul.mubr.bf16.vlgmr.msra.gmra.mxu1 %v93_v36  ;;  %v1929_v36 = vld [vmem:[#allocation8 + $0x2f0] ss:$12 sps:$4 sm:$0xff]   ;;  %s2086_s9 = scalar_lea.vmem %s1511_s8, 128  ;;  %p2091_p12 = scmp.lt.s32.totalorder %s1511_s8, %s1511_s8 }
  0x63   :  { %1056 = vmatpush1.bf16.msra.mxu0 %v1832_v37  ;;  %1097 = vmatpush1.bf16.msra.mxu1 %v1835_v38  ;;  %v128_v37 = vlaneseq  ;;  %p2087_p11 = scmp.ne.s32.totalorder %s1511_s8, %s2086_s9  ;;  %p2092_p13 = scmp.lt.s32.totalorder %s2086_s9, %s2086_s9 }
  0x64   :  { %1057 = vmatprep.subr.bf16.mxu0 %v1840_v39  ;;  %1098 = vmatprep.subr.bf16.mxu1 %v1843_v40 }
  0x65   :  { %v2184_v38 = vshrl.u32 %v128_v37, 7  ;;  %v1963_v37 = vld [vmem:[#allocation10 + $0x30] sm:$0xff]   ;;  %p2093_p0 = por %p2092_p13, %p2091_p12 }
  0x67   :  { %1058 = vmatpush1.bf16.msra.mxu0 %v1838_v41  ;;  %1099 = vmatpush1.bf16.msra.mxu1 %v1841_v42  ;;  %v130_v39 = vsub.s32 0, %v2184_v38  ;;  %v138_v40 = vsub.s32 2, %v2184_v38  ;;  %v126_v41 = vld [vmem:[#allocation7] sm:$0xf]  ;;  %v134_v42 = vsub.s32 1, %v2184_v38  ;;  %p2094_p1 = pnand %p2093_p0, %p2087_p11 }
  0x68   :  { %1059 = vmatprep.subr.bf16.mxu0 %v1846_v43  ;;  %1100 = vmatprep.subr.bf16.mxu1 %v1849_v44  ;;  %v142_v43 = vsub.s32 3, %v2184_v38  ;;  %v1649_v38 = vld [vmem:[%s2225_s6] ss:$0 sm:$0xff] }
  0x69   :  { %v131_v44 = vrot.slane %v126_v41, %v130_v39 }
  0x6b   :  { %1060 = vmatpush1.bf16.msra.mxu0 %v1844_v45  ;;  %1101 = vmatpush1.bf16.msra.mxu1 %v1847_v46  ;;  %v139_v45 = vrot.slane %v126_v41, %v138_v40  ;;  %v135_v46 = vrot.slane %v126_v41, %v134_v42 }
  0x6c   :  { %1061 = vmatprep.subr.bf16.mxu0 %v1852_v47  ;;  %1102 = vmatprep.subr.bf16.mxu1 %v1855_v48  ;;  %v143_v47 = vrot.slane %v126_v41, %v142_v43  ;;  %v1964_v41 = vld [vmem:[#allocation10 + $0x68] sm:$0xff]  }
  0x6d   :  { %v1965_v43 = vld [vmem:[#allocation10 + $0x28] sm:$0xff]  }
  0x6f   :  { %1062 = vmatpush1.bf16.msra.mxu0 %v1850_v49  ;;  %1103 = vmatpush1.bf16.msra.mxu1 %v1853_v50 }
  0x70   :  { %1063 = vmatprep.subr.bf16.mxu0 %v1858_v51  ;;  %1104 = vmatprep.subr.bf16.mxu1 %v1861_v52 }
  0x73   :  { %1064 = vmatpush1.bf16.msra.mxu0 %v1856_v53  ;;  %1105 = vmatpush1.bf16.msra.mxu1 %v1859_v54 }
  0x74   :  { %1065 = vmatprep.subr.bf16.mxu0 %v1864_v55  ;;  %1106 = vmatprep.subr.bf16.mxu1 %v1867_v56 }
  0x77   :  { %1066 = vmatpush1.bf16.msra.mxu0 %v1862_v57  ;;  %1107 = vmatpush1.bf16.msra.mxu1 %v1865_v58 }
  0x78   :  { %1067 = vmatprep.subr.bf16.mxu0 %v1870_v59  ;;  %1108 = vmatprep.subr.bf16.mxu1 %v1873_v60 }
  0x7b   :  { %1068 = vmatpush1.bf16.msra.mxu0 %v1868_v61  ;;  %1109 = vmatpush1.bf16.msra.mxu1 %v1871_v62 }
  0x7c   :  { %1069 = vmatprep.subr.bf16.mxu0 %v1876_v63  ;;  %1110 = vmatprep.subr.bf16.mxu1 %v1879_v0 }
  0x7f   :  { %1070 = vmatpush1.bf16.msra.mxu0 %v1874_v1  ;;  %1111 = vmatpush1.bf16.msra.mxu1 %v1877_v2 }
  0x80   :  { %1071 = vmatprep.subr.bf16.mxu0 %v1882_v3  ;;  %1112 = vmatprep.subr.bf16.mxu1 %v1885_v4  ;;  %v1930_v3 = vld [vmem:[#allocation8 + $0xb0] ss:$12 sps:$4 sm:$0xff]  }
  0x81   :  { %v1931_v4 = vld [vmem:[#allocation8 + $0x230] ss:$12 sps:$4 sm:$0xff]  }
  0x83   :  { %1072 = vmatpush2.bf16.msra.mxu0 %v1880_v5  ;;  %1113 = vmatpush2.bf16.msra.mxu1 %v1883_v6  ;;  %v1932_v6 = vld [vmem:[#allocation8 + $0x158] ss:$12 sps:$4 sm:$0xff]  }
  0x84   :  { %1073 = vmatprep.subr.bf16.mxu0 %v1888_v7  ;;  %1114 = vmatprep.subr.bf16.mxu1 %v1891_v8  ;;  %v1933_v7 = vld [vmem:[#allocation8 + $0x2d8] ss:$12 sps:$4 sm:$0xff]  }
  0x85   :  { %v1934_v8 = vld [vmem:[#allocation8 + $0x98] ss:$12 sps:$4 sm:$0xff]  }
  0x87   :  { %1074 = vmatpush2.bf16.msra.mxu0 %v1886_v9  ;;  %1115 = vmatpush2.bf16.msra.mxu1 %v1889_v10  ;;  %v1935_v9 = vld [vmem:[#allocation8 + $0x218] ss:$12 sps:$4 sm:$0xff]   ;;  %v1936_v10 = vld [vmem:[#allocation8 + $0x140] ss:$12 sps:$4 sm:$0xff]  }
  0x88   :  { %1075 = vmatprep.subr.bf16.mxu0 %v1894_v11  ;;  %1116 = vmatprep.subr.bf16.mxu1 %v1897_v12  ;;  %v1937_v11 = vld [vmem:[#allocation8 + $0x2c0] ss:$12 sps:$4 sm:$0xff]  }
  0x89   :  { %v1938_v12 = vld [vmem:[#allocation8 + $0x80] ss:$12 sps:$4 sm:$0xff]  }
  0x8b   :  { %1076 = vmatpush2.bf16.msra.mxu0 %v1892_v13  ;;  %1117 = vmatpush2.bf16.msra.mxu1 %v1895_v14  ;;  %v1939_v13 = vld [vmem:[#allocation8 + $0x200] ss:$12 sps:$4 sm:$0xff]   ;;  %v1940_v14 = vld [vmem:[#allocation8 + $0x128] ss:$12 sps:$4 sm:$0xff]  }
  0x8c   :  { %1077 = vmatprep.subr.bf16.mxu0 %v1900_v15  ;;  %1118 = vmatprep.subr.bf16.mxu1 %v1903_v16  ;;  %v1941_v15 = vld [vmem:[#allocation8 + $0x2a8] ss:$12 sps:$4 sm:$0xff]  }
  0x8d   :  { %v1942_v16 = vld [vmem:[#allocation8 + $0x68] ss:$12 sps:$4 sm:$0xff]  }
  0x8f   :  { %1078 = vmatpush2.bf16.msra.mxu0 %v1898_v17  ;;  %1119 = vmatpush2.bf16.msra.mxu1 %v1901_v18  ;;  %v1943_v17 = vld [vmem:[#allocation8 + $0x1e8] ss:$12 sps:$4 sm:$0xff]   ;;  %v1944_v18 = vld [vmem:[#allocation8 + $0x110] ss:$12 sps:$4 sm:$0xff]  }
  0x90   :  { %1079 = vmatprep.subr.bf16.mxu0 %v1906_v19  ;;  %1120 = vmatprep.subr.bf16.mxu1 %v1909_v20  ;;  %v1945_v19 = vld [vmem:[#allocation8 + $0x290] ss:$12 sps:$4 sm:$0xff]  }
  0x91   :  { %v1946_v20 = vld [vmem:[#allocation8 + $0x50] ss:$12 sps:$4 sm:$0xff]  }
  0x93   :  { %1080 = vmatpush2.bf16.msra.mxu0 %v1904_v21  ;;  %1121 = vmatpush2.bf16.msra.mxu1 %v1907_v22  ;;  %v1947_v21 = vld [vmem:[#allocation8 + $0x1d0] ss:$12 sps:$4 sm:$0xff]   ;;  %v1948_v22 = vld [vmem:[#allocation8 + $0xf8] ss:$12 sps:$4 sm:$0xff]  }
  0x94   :  { %1081 = vmatprep.subr.bf16.mxu0 %v1912_v23  ;;  %1122 = vmatprep.subr.bf16.mxu1 %v1915_v24  ;;  %v1949_v23 = vld [vmem:[#allocation8 + $0x278] ss:$12 sps:$4 sm:$0xff]  }
  0x95   :  { %v1950_v24 = vld [vmem:[#allocation8 + $0x38] ss:$12 sps:$4 sm:$0xff]  }
  0x97   :  { %1082 = vmatpush2.bf16.msra.mxu0 %v1910_v25  ;;  %1123 = vmatpush2.bf16.msra.mxu1 %v1913_v26  ;;  %v1951_v25 = vld [vmem:[#allocation8 + $0x1b8] ss:$12 sps:$4 sm:$0xff]   ;;  %v1952_v26 = vld [vmem:[#allocation8 + $0xe0] ss:$12 sps:$4 sm:$0xff]  }
  0x98   :  { %1083 = vmatprep.subr.bf16.mxu0 %v1918_v27  ;;  %1124 = vmatprep.subr.bf16.mxu1 %v1921_v28  ;;  %v1953_v27 = vld [vmem:[#allocation8 + $0x260] ss:$12 sps:$4 sm:$0xff]  }
  0x99   :  { %v1954_v28 = vld [vmem:[#allocation8 + $0x20] ss:$12 sps:$4 sm:$0xff]  }
  0x9b   :  { %1084 = vmatpush2.bf16.msra.mxu0 %v1916_v29  ;;  %1125 = vmatpush2.bf16.msra.mxu1 %v1919_v30  ;;  %v1955_v29 = vld [vmem:[#allocation8 + $0x1a0] ss:$12 sps:$4 sm:$0xff]   ;;  %v1956_v30 = vld [vmem:[#allocation8 + $0xc8] ss:$12 sps:$4 sm:$0xff]  }
  0x9c   :  { %1085 = vmatprep.subr.bf16.mxu0 %v1924_v31  ;;  %1126 = vmatprep.subr.bf16.mxu1 %v1927_v32  ;;  %v1957_v31 = vld [vmem:[#allocation8 + $0x248] ss:$12 sps:$4 sm:$0xff]  }
  0x9d   :  { %v1958_v32 = vld [vmem:[#allocation8 + $0x8] ss:$12 sps:$4 sm:$0xff]  }
  0x9f   :  { %1086 = vmatpush2.bf16.msra.mxu0 %v1922_v33  ;;  %1127 = vmatpush2.bf16.msra.mxu1 %v1925_v34  ;;  %v1959_v33 = vld [vmem:[#allocation8 + $0x188] ss:$12 sps:$4 sm:$0xff]   ;;  %v1960_v34 = vld [vmem:[#allocation10 + $0x78] sm:$0xff]  }
  0xa0   :  { %1674 = vmatprep.subr.bf16.mxu0 %v1928_v35  ;;  %1696 = vmatprep.subr.bf16.mxu1 %v1929_v36  ;;  %v1961_v35 = vld [vmem:[#allocation10 + $0x38] sm:$0xff]   ;;  %v1962_v36 = vld [vmem:[#allocation10 + $0x70] sm:$0xff]  }
 0x122   :  { %v342_v48 = vpop.f32.mrf.mxu0  ;;  %v383_v49 = vpop.f32.mrf.mxu1 }
 0x123   :  { %v343_v50 = vadd.f32 %v342_v48, %v131_v44  ;;  %v384_v51 = vadd.f32 %v383_v49, %v139_v45  ;;  %v1966_v44 = vld [vmem:[#allocation10 + $0x60] sm:$0xff]   ;;  %v1970_v48 = vld [vmem:[#allocation10 + $0x50] sm:$0xff]  }
 0x124   :  { %v344_v52 = vpop.f32.mrf.mxu0  ;;  %v385_v53 = vpop.f32.mrf.mxu1  ;;  %v1967_v45 = vld [vmem:[#allocation10 + $0x20] sm:$0xff]   ;;  %v1971_v49 = vld [vmem:[#allocation10 + $0x10] sm:$0xff]  }
 0x125   :  { %v392_v54 = vmax.f32 %v384_v51, 0.0  ;;  %v345_v55 = vadd.f32 %v344_v52, %v135_v46  ;;  %v386_v56 = vadd.f32 %v385_v53, %v143_v47  ;;  %v390_v57 = vmax.f32 %v343_v50, 0.0  ;;  %v1968_v46 = vld [vmem:[#allocation10 + $0x58] sm:$0xff]   ;;  %v1972_v50 = vld [vmem:[#allocation10 + $0x48] sm:$0xff]   ;;  %v1974_v52 = vld [vmem:[#allocation10 + $0x40] sm:$0xff]  }
 0x126   :  { %v346_v58 = vpop.f32.mrf.mxu0  ;;  %v387_v59 = vpop.f32.mrf.mxu1  ;;  %v1969_v47 = vld [vmem:[#allocation10 + $0x18] sm:$0xff]   ;;  %v1973_v51 = vld [vmem:[#allocation10 + $0x8] sm:$0xff]   ;;  %v1975_v53 = vld [vmem:[#allocation10] sm:$0xff]  }
 0x127   :  { %v391_v60 = vmax.f32 %v345_v55, 0.0  ;;  %v393_v61 = vmax.f32 %v386_v56, 0.0  ;;  %v2196_v62 = vpack.c.bf16 %v392_v54, %v392_v54  ;;  %v2198_v5 = vpack.c.bf16 %v390_v57, %v390_v57  ;;  %v1976_v54 = vld [vmem:[#allocation10 + $0xb8] sm:$0xff]   ;;  %v1977_v56 = vld [vmem:[#allocation10 + $0xb0] sm:$0xff]   ;;  %v1978_v57 = vld [vmem:[#allocation10 + $0xa8] sm:$0xff]  }
 0x128   :  { %v347_v63 = vpop.f32.mrf.mxu0  ;;  %v388_v0 = vpop.f32.mrf.mxu1  ;;  %v2126_v55 = vmov 0.0   ;;  %v1979_v58 = vld [vmem:[#allocation10 + $0xa0] sm:$0xff]   ;;  %v1980_v59 = vld [vmem:[#allocation10 + $0x98] sm:$0xff]  }
 0x129   :  { %v395_v1 = vpack.c.bf16 %v391_v60, %v391_v60  ;;  %v397_v2 = vpack.c.bf16 %v393_v61, %v393_v61  ;;  %v1981_v60 = vld [vmem:[#allocation10 + $0x90] sm:$0xff]   ;;  %v1982_v61 = vld [vmem:[#allocation10 + $0x88] sm:$0xff]  }
 0x12a   :  { %v526_v63 = vld [vmem:[%s2223_s4] sm:$0x7] }
 0x12b   :  { %1087 = vmatprep.mubr.bf16.mxu0 %v395_v1  ;;  %1128 = vmatprep.mubr.bf16.mxu1 %v397_v2  ;;  %v531_v0 = vrot.slane %v526_v63, %v130_v39 }
 0x12c   :  { %1088 = vmatmul.mubr.bf16.vlgmr.msra.gmra.mxu0 %v2198_v5  ;;  %1129 = vmatmul.mubr.bf16.vlgmr.msra.gmra.mxu1 %v2196_v62 }
 0x12d   :  { %1675 = vmatpush3.bf16.msra.mxu0 %v1930_v3  ;;  %1697 = vmatpush3.bf16.msra.mxu1 %v1931_v4 }
 0x12e   :  { %1169 = vmatprep.mubr.bf16.mxu0 %v395_v1  ;;  %1209 = vmatprep.mubr.bf16.mxu1 %v397_v2  ;;  %v535_v1 = vrot.slane %v526_v63, %v134_v42 }
 0x12f   :  { %1676 = vmatprep.subr.bf16.mxu0 %v1932_v6  ;;  %1698 = vmatprep.subr.bf16.mxu1 %v1933_v7 }
 0x131   :  { %1677 = vmatpush3.bf16.msra.mxu0 %v1934_v8  ;;  %1699 = vmatpush3.bf16.msra.mxu1 %v1935_v9 }
 0x132   :  { %1678 = vmatprep.subr.bf16.mxu0 %v1936_v10  ;;  %1700 = vmatprep.subr.bf16.mxu1 %v1937_v11 }
 0x135   :  { %1679 = vmatpush3.bf16.msra.mxu0 %v1938_v12  ;;  %1701 = vmatpush3.bf16.msra.mxu1 %v1939_v13 }
 0x136   :  { %1680 = vmatprep.subr.bf16.mxu0 %v1940_v14  ;;  %1702 = vmatprep.subr.bf16.mxu1 %v1941_v15 }
 0x139   :  { %1681 = vmatpush3.bf16.msra.mxu0 %v1942_v16  ;;  %1703 = vmatpush3.bf16.msra.mxu1 %v1943_v17 }
 0x13a   :  { %1682 = vmatprep.subr.bf16.mxu0 %v1944_v18  ;;  %1704 = vmatprep.subr.bf16.mxu1 %v1945_v19  ;;  %v539_v18 = vrot.slane %v526_v63, %v138_v40 }
 0x13d   :  { %1683 = vmatpush3.bf16.msra.mxu0 %v1946_v20  ;;  %1705 = vmatpush3.bf16.msra.mxu1 %v1947_v21 }
 0x13e   :  { %1684 = vmatprep.subr.bf16.mxu0 %v1948_v22  ;;  %1706 = vmatprep.subr.bf16.mxu1 %v1949_v23 }
 0x141   :  { %1685 = vmatpush3.bf16.msra.mxu0 %v1950_v24  ;;  %1707 = vmatpush3.bf16.msra.mxu1 %v1951_v25 }
 0x142   :  { %1686 = vmatprep.subr.bf16.mxu0 %v1952_v26  ;;  %1708 = vmatprep.subr.bf16.mxu1 %v1953_v27 }
 0x145   :  { %1687 = vmatpush3.bf16.msra.mxu0 %v1954_v28  ;;  %1709 = vmatpush3.bf16.msra.mxu1 %v1955_v29 }
 0x146   :  { %1688 = vmatprep.subr.bf16.mxu0 %v1956_v30  ;;  %1710 = vmatprep.subr.bf16.mxu1 %v1957_v31 }
 0x149   :  { %1689 = vmatpush3.bf16.msra.mxu0 %v1958_v32  ;;  %1711 = vmatpush3.bf16.msra.mxu1 %v1959_v33 }
 0x14a   :  { %1718 = vmatprep.subr.bf16.mxu0 %v1960_v34  ;;  %1749 = vmatprep.subr.bf16.mxu1 %v2126_v55 }
 0x14c   :  { %1170 = vmatmul.mubr.bf16.vlgmr.msra.gmra.mxu0 %v2198_v5  ;;  %1210 = vmatmul.mubr.bf16.vlgmr.msra.gmra.mxu1 %v2196_v62  ;;  %v1983_v62 = vld [vmem:[#allocation10 + $0x80] sm:$0xff]  }
 0x14d   :  { %1719 = vmatpush3.bf16.msra.mxu0 %v1961_v35  ;;  %1750 = vmatpush3.bf16.msra.mxu1 %v1976_v54 }
 0x14e   :  { %1720 = vmatprep.subr.bf16.mxu0 %v1962_v36  ;;  %1751 = vmatprep.subr.bf16.mxu1 %v2126_v55 }
 0x14f   :  { %1765 = vmatprep.mubr.msk.bf16.mxu1 %vm2127_vm0, %v2126_v55 }
 0x151   :  { %1721 = vmatpush3.bf16.msra.mxu0 %v1963_v37  ;;  %1752 = vmatpush3.bf16.msra.mxu1 %v1977_v56 }
 0x152   :  { %1722 = vmatprep.subr.bf16.mxu0 %v1964_v41  ;;  %1753 = vmatprep.subr.bf16.mxu1 %v2126_v55 }
 0x155   :  { %1723 = vmatpush3.bf16.msra.mxu0 %v1965_v43  ;;  %1754 = vmatpush3.bf16.msra.mxu1 %v1978_v57 }
 0x156   :  { %1724 = vmatprep.subr.bf16.mxu0 %v1966_v44  ;;  %1755 = vmatprep.subr.bf16.mxu1 %v2126_v55 }
 0x159   :  { %1725 = vmatpush3.bf16.msra.mxu0 %v1967_v45  ;;  %1756 = vmatpush3.bf16.msra.mxu1 %v1979_v58 }
 0x15a   :  { %1726 = vmatprep.subr.bf16.mxu0 %v1968_v46  ;;  %1757 = vmatprep.subr.bf16.mxu1 %v2126_v55 }
 0x15d   :  { %1727 = vmatpush3.bf16.msra.mxu0 %v1969_v47  ;;  %1758 = vmatpush3.bf16.msra.mxu1 %v1980_v59 }
 0x15e   :  { %1728 = vmatprep.subr.bf16.mxu0 %v1970_v48  ;;  %1759 = vmatprep.subr.bf16.mxu1 %v2126_v55 }
 0x161   :  { %1729 = vmatpush3.bf16.msra.mxu0 %v1971_v49  ;;  %1760 = vmatpush3.bf16.msra.mxu1 %v1981_v60 }
 0x162   :  { %1730 = vmatprep.subr.bf16.mxu0 %v1972_v50  ;;  %1761 = vmatprep.subr.bf16.mxu1 %v2126_v55 }
 0x165   :  { %1731 = vmatpush3.bf16.msra.mxu0 %v1973_v51  ;;  %1762 = vmatpush3.bf16.msra.mxu1 %v1982_v61 }
 0x166   :  { %1732 = vmatprep.subr.bf16.mxu0 %v1974_v52  ;;  %1763 = vmatprep.subr.bf16.mxu1 %v2126_v55 }
 0x169   :  { %1733 = vmatpush3.bf16.msra.mxu0 %v1975_v53  ;;  %1764 = vmatpush3.bf16.msra.mxu1 %v1983_v62 }
 0x1ec   :  { %v1089_v2 = vpop.f32.mrf.mxu0  ;;  %v1130_v3 = vpop.f32.mrf.mxu1 }
 0x1ed   :  { %v1090_v4 = vadd.f32 %v1089_v2, %v531_v0 }
 0x1ee   :  { %v1091_v5 = vpop.f32.mrf.mxu0  ;;  %v1132_v6 = vpop.f32.mrf.mxu1 }
 0x1ef   :  { %v1131_v7 = vadd.f32 %v1130_v3, %v1090_v4  ;;  %v1092_v8 = vadd.f32 %v1091_v5, %v535_v1 }
 0x1f0   :  { %v1093_v9 = vpop.f32.mrf.mxu0  ;;  %v1134_v10 = vpop.f32.mrf.mxu1 }
 0x1f1   :  { %v1133_v11 = vadd.f32 %v1132_v6, %v1092_v8  ;;  %v1217_v12 = vmax.f32 %v1131_v7, 0.0 }
 0x1f2   :  { %v1094_v13 = vpop.f32.mrf.mxu0  ;;  %v1135_v14 = vpop.f32.mrf.mxu1 }
 0x1f3   :  { %v1218_v15 = vmax.f32 %v1133_v11, 0.0  ;;  %v1220_v17 = vpack.c.bf16 %v1217_v12, %v1217_v12 }
 0x1f5   :  { %v1221_v16 = vpack.c.bf16 %v1218_v15, %v1218_v15 }
 0x1f7   :  { %1454 = vmatprep.mubr.bf16.mxu0 %v1221_v16 }
 0x1f8   :  { %1455 = vmatmul.mubr.bf16.vlgmr.msra.gmra.mxu0 %v1220_v17 }
 0x20c   :  { %v1690_v39 = vpop.f32.mrf.mxu0  ;;  %v1712_v42 = vpop.f32.mrf.mxu1 }
 0x20e   :  { %v1691_v19 = vpop.f32.mrf.mxu0  ;;  %v1713_v20 = vpop.f32.mrf.mxu1 }
 0x20f   :  { %v1692_v21 = vadd.f32 %v1691_v19, %v1690_v39  ;;  %v1714_v25 = vadd.f32 %v1713_v20, %v1712_v42 }
 0x210   :  { %v1693_v22 = vpop.f32.mrf.mxu0  ;;  %v1715_v23 = vpop.f32.mrf.mxu1 }
 0x211   :  { %v1172_v24 = vadd.f32 %v1692_v21, %v539_v18 }
 0x212   :  { %v1694_v26 = vpop.f32.mrf.mxu0  ;;  %v1716_v27 = vpop.f32.mrf.mxu1 }
 0x213   :  { %v1212_v28 = vadd.f32 %v1714_v25, %v1172_v24 }
 0x215   :  { %v1219_v29 = vmax.f32 %v1212_v28, 0.0 }
 0x217   :  { %v1222_v30 = vpack.c.bf16 %v1219_v29, %v1219_v29 }
 0x219   :  { %1766 = vmatmul.mubr.bf16.vlgmr.msra.gmra.mxu1 %v1222_v30 }
 0x2b8   :  { %v1734_v31 = vpop.f32.mrf.mxu0 }
 0x2ba   :  { %v1735_v32 = vpop.f32.mrf.mxu0 }
 0x2bb   :  { %v1736_v35 = vadd.f32 %v1735_v32, %v1734_v31 }
 0x2bc   :  { %v1737_v33 = vpop.f32.mrf.mxu0 }
 0x2bd   :  { %v1457_v40 = vadd.f32 %v1736_v35, %v1649_v38 }
 0x2be   :  { %v1738_v34 = vpop.f32.mrf.mxu0 }
 0x2d9   :  { %v1496_v36 = vpop.f32.mrf.mxu1 }
 0x2da   :  { %v1497_v37 = vadd.f32 %v1496_v36, %v1457_v40 }
 0x2db   :  { %v1767_v41 = vpop.f32.mrf.mxu1 }
 0x2dc   :  { %1984 = vtanh.f32 %v1497_v37 }
 0x2dd   :  { %v1499_v43 = vpop.f32.mrf.mxu1 }
 0x2df   :  { %v1768_v44 = vpop.f32.mrf.mxu1 }
 0x2e9   :  { %v1985_v45 = vpop.eup %1984 }
 0x2ea   :  { %1503 = vst [vmem:[#allocation11] sm:$0xff] %v1985_v45 }
 0x2eb   :  { %2097 = shalt.err (!%p2094_p1)
}
 0x2ec   :  { %1513 = dma.vmem_to_hbm [thread:$0]  %s1511_s8, 128, %s2226_s7, [#allocation4]  }
 0x2ed   :  { %2112 = dma.done.wait [#allocation4], 128  }
 0x2ee   :  { %2113 = vsyncadd [#allocation4], 4294967168 }
 0x2ef   :  { %1517 = vsyncpa [#allocation3], 1 }
 0x2f0   :  { %1518 = vsyncpa [#allocation6], 1 }
 0x2f1   :  { %1519 = vsyncpa [#allocation9], 1 }
 0x2f2   :  { %1520 = vsyncpa [#allocation4], 1 }

</bundles_post_ra>
